<compile_context>
chip_gen: v5e
topology: v5e:2x2
jax: 0.10.0
libtpu: 0.0.40
codegen_flags: <defaults>
</compile_context>

<pallas_src>
import functools

import jax
import jax.numpy as jnp
from jax.experimental import pallas as pl
from jax.experimental.pallas import tpu as pltpu

EPS = 1e-5
_VMEM_LIMIT = 32 * 1024 * 1024          # explicit scoped-VMEM request (safe on v5e/v6e/v7x)
_FUSED_VMEM_BUDGET = 20 * 1024 * 1024   # use the fused single-call path below this footprint


# --------------------------------------------------------------------------------------
# Fused single-call kernel (whole problem resident in VMEM).
# --------------------------------------------------------------------------------------
def _fused_kernel(x_ref, w1_ref, g1_ref, beta1_ref, w2_ref, o_ref):
    inv_n = 1.0 / x_ref.shape[0]

    # Linear(input_dim -> hidden_dim); bias dropped (cancels against BN1 mean-subtract).
    h = jnp.dot(x_ref[...], w1_ref[...], preferred_element_type=jnp.float32)

    # BatchNorm1d(hidden_dim): single-pass stats, folded scale/shift, then ReLU.
    m1 = jnp.sum(h, axis=0, keepdims=True) * inv_n
    v1 = jnp.sum(h * h, axis=0, keepdims=True) * inv_n - m1 * m1
    scale1 = g1_ref[...].astype(jnp.float32) * jax.lax.rsqrt(v1 + EPS)
    shift1 = beta1_ref[...].astype(jnp.float32) - m1 * scale1
    hn = jnp.maximum(h * scale1 + shift1, 0.0)

    # Linear(hidden_dim -> output_dim); bias dropped (cancels against BN2).
    y = jnp.dot(hn.astype(w2_ref.dtype), w2_ref[...], preferred_element_type=jnp.float32)

    # BatchNorm1d(output_dim, affine=False): folded to 2 ops/element.
    m2 = jnp.sum(y, axis=0, keepdims=True) * inv_n
    v2 = jnp.sum(y * y, axis=0, keepdims=True) * inv_n - m2 * m2
    inv_std2 = jax.lax.rsqrt(v2 + EPS)
    o_ref[...] = (y * inv_std2 - m2 * inv_std2).astype(o_ref.dtype)


def _global_embedding_fused(x, w1, g1, beta1, w2):
    n, d = x.shape
    h_dim = w1.shape[1]
    o_dim = w2.shape[1]
    cost = pl.CostEstimate(
        flops=2 * n * (d * h_dim + h_dim * o_dim),
        transcendentals=h_dim + o_dim,
        bytes_accessed=4 * (n * d + d * h_dim + h_dim * o_dim + 2 * h_dim + n * o_dim),
    )
    return pl.pallas_call(
        _fused_kernel,
        out_shape=jax.ShapeDtypeStruct((n, o_dim), x.dtype),
        in_specs=[pl.BlockSpec(memory_space=pltpu.MemorySpace.VMEM)] * 5,
        out_specs=pl.BlockSpec(memory_space=pltpu.MemorySpace.VMEM),
        cost_estimate=cost,
        compiler_params=pltpu.CompilerParams(vmem_limit_bytes=_VMEM_LIMIT),
    )(x, w1, g1, beta1, w2)


# --------------------------------------------------------------------------------------
# N-tiled 3-phase pipeline (BN statistics are still over the FULL batch).
# --------------------------------------------------------------------------------------
def _mm1_stats_kernel(x_ref, w1_ref, h_ref, s_ref, q_ref):
    i = pl.program_id(0)
    h = jnp.dot(x_ref[...], w1_ref[...], preferred_element_type=jnp.float32)
    h_ref[...] = h

    @pl.when(i == 0)
    def _():
        s_ref[...] = jnp.zeros_like(s_ref)
        q_ref[...] = jnp.zeros_like(q_ref)

    s_ref[...] += jnp.sum(h, axis=0, keepdims=True)
    q_ref[...] += jnp.sum(h * h, axis=0, keepdims=True)


def _bn1_relu_mm2_stats_kernel(h_ref, s1_ref, q1_ref, g1_ref, beta1_ref, w2_ref,
                               y_ref, s2_ref, q2_ref, *, inv_n):
    i = pl.program_id(0)
    m1 = s1_ref[...] * inv_n
    v1 = q1_ref[...] * inv_n - m1 * m1
    scale = g1_ref[...].astype(jnp.float32) * jax.lax.rsqrt(v1 + EPS)
    shift = beta1_ref[...].astype(jnp.float32) - m1 * scale
    hn = jnp.maximum(h_ref[...] * scale + shift, 0.0)

    y = jnp.dot(hn.astype(w2_ref.dtype), w2_ref[...], preferred_element_type=jnp.float32)
    y_ref[...] = y

    @pl.when(i == 0)
    def _():
        s2_ref[...] = jnp.zeros_like(s2_ref)
        q2_ref[...] = jnp.zeros_like(q2_ref)

    s2_ref[...] += jnp.sum(y, axis=0, keepdims=True)
    q2_ref[...] += jnp.sum(y * y, axis=0, keepdims=True)


def _bn2_kernel(y_ref, s2_ref, q2_ref, o_ref, *, inv_n):
    m2 = s2_ref[...] * inv_n
    v2 = q2_ref[...] * inv_n - m2 * m2
    inv_std = jax.lax.rsqrt(v2 + EPS)
    o_ref[...] = (y_ref[...] * inv_std - m2 * inv_std).astype(o_ref.dtype)


def _pick_tile(n, max_tile=1024):
    """Largest multiple-of-8 divisor of n that is <= max_tile (else n itself)."""
    best = None
    t = 8
    while t <= min(n, max_tile):
        if n % t == 0:
            best = t
        t += 8
    return best if best is not None else n


def _global_embedding_tiled(x, w1, g1, beta1, w2, *, tile_n=None):
    n, d = x.shape
    h_dim = w1.shape[1]
    o_dim = w2.shape[1]
    if tile_n is None:
        tile_n = _pick_tile(n)
    assert n % tile_n == 0, "batch must be divisible by the row tile"
    grid = (n // tile_n,)
    inv_n = 1.0 / n
    cp_acc = pltpu.CompilerParams(dimension_semantics=("arbitrary",),
                                  vmem_limit_bytes=_VMEM_LIMIT)
    cp_par = pltpu.CompilerParams(dimension_semantics=("parallel",),
                                  vmem_limit_bytes=_VMEM_LIMIT)

    # Phase A: h = x @ w1, accumulate per-column sum / sum-of-squares of h.
    h, s1, q1 = pl.pallas_call(
        _mm1_stats_kernel,
        grid=grid,
        in_specs=[
            pl.BlockSpec((tile_n, d), lambda i: (i, 0)),
            pl.BlockSpec((d, h_dim), lambda i: (0, 0)),
        ],
        out_specs=[
            pl.BlockSpec((tile_n, h_dim), lambda i: (i, 0)),
            pl.BlockSpec((1, h_dim), lambda i: (0, 0)),
            pl.BlockSpec((1, h_dim), lambda i: (0, 0)),
        ],
        out_shape=[
            jax.ShapeDtypeStruct((n, h_dim), jnp.float32),
            jax.ShapeDtypeStruct((1, h_dim), jnp.float32),
            jax.ShapeDtypeStruct((1, h_dim), jnp.float32),
        ],
        compiler_params=cp_acc,
        cost_estimate=pl.CostEstimate(
            flops=2 * n * d * h_dim, transcendentals=0,
            bytes_accessed=4 * (n * d + d * h_dim + n * h_dim)),
    )(x, w1)

    # Phase B: BN1 (folded scale/shift) + ReLU + y = hn @ w2, accumulate stats of y.
    y, s2, q2 = pl.pallas_call(
        functools.partial(_bn1_relu_mm2_stats_kernel, inv_n=inv_n),
        grid=grid,
        in_specs=[
            pl.BlockSpec((tile_n, h_dim), lambda i: (i, 0)),
            pl.BlockSpec((1, h_dim), lambda i: (0, 0)),
            pl.BlockSpec((1, h_dim), lambda i: (0, 0)),
            pl.BlockSpec((1, h_dim), lambda i: (0, 0)),
            pl.BlockSpec((1, h_dim), lambda i: (0, 0)),
            pl.BlockSpec((h_dim, o_dim), lambda i: (0, 0)),
        ],
        out_specs=[
            pl.BlockSpec((tile_n, o_dim), lambda i: (i, 0)),
            pl.BlockSpec((1, o_dim), lambda i: (0, 0)),
            pl.BlockSpec((1, o_dim), lambda i: (0, 0)),
        ],
        out_shape=[
            jax.ShapeDtypeStruct((n, o_dim), jnp.float32),
            jax.ShapeDtypeStruct((1, o_dim), jnp.float32),
            jax.ShapeDtypeStruct((1, o_dim), jnp.float32),
        ],
        compiler_params=cp_acc,
        cost_estimate=pl.CostEstimate(
            flops=2 * n * h_dim * o_dim, transcendentals=h_dim,
            bytes_accessed=4 * (n * h_dim + h_dim * o_dim + n * o_dim)),
    )(h, s1, q1, g1, beta1, w2)

    # Phase C: BN2 (affine=False), lane-dense tiled stores, fully parallel over N.
    out = pl.pallas_call(
        functools.partial(_bn2_kernel, inv_n=inv_n),
        grid=grid,
        in_specs=[
            pl.BlockSpec((tile_n, o_dim), lambda i: (i, 0)),
            pl.BlockSpec((1, o_dim), lambda i: (0, 0)),
            pl.BlockSpec((1, o_dim), lambda i: (0, 0)),
        ],
        out_specs=pl.BlockSpec((tile_n, o_dim), lambda i: (i, 0)),
        out_shape=jax.ShapeDtypeStruct((n, o_dim), x.dtype),
        compiler_params=cp_par,
        cost_estimate=pl.CostEstimate(
            flops=2 * n * o_dim, transcendentals=o_dim,
            bytes_accessed=4 * (2 * n * o_dim)),
    )(y, s2, q2)
    return out


# --------------------------------------------------------------------------------------
# Public wrapper (PyTorch-parameter parity; biases accepted but provably unused).
# --------------------------------------------------------------------------------------
def global_embedding(x, w1, b1, g1, beta1, w2, b2, *, tile_n=None, force_tiled=False):
    # b1/b2 are accepted for API parity with nn.Linear, but a Linear bias immediately
    # followed by training-mode BatchNorm mean subtraction cancels exactly, so the
    # forward output does not depend on them.  (Running-stat tracking would.)
    del b1, b2
    n, d = x.shape
    h_dim = w1.shape[1]
    o_dim = w2.shape[1]
    # Rough resident-VMEM footprint of the fused path (activations + weights, f32).
    footprint = 4 * (n * (d + 2 * h_dim + 2 * o_dim) + d * h_dim + h_dim * o_dim)
    if not force_tiled and footprint <= _FUSED_VMEM_BUDGET:
        return _global_embedding_fused(x, w1, g1, beta1, w2)
    return _global_embedding_tiled(x, w1, g1, beta1, w2, tile_n=tile_n)


# --------------------------------------------------------------------------------------
# Pure-JAX reference (uses the biases and two-pass variance, i.e. the literal module).
# --------------------------------------------------------------------------------------
def reference(x, w1, b1, g1, beta1, w2, b2):
    h = x.astype(jnp.float32) @ w1.astype(jnp.float32) + b1
    m1 = h.mean(0, keepdims=True)
    v1 = ((h - m1) ** 2).mean(0, keepdims=True)
    h = jnp.maximum((h - m1) / jnp.sqrt(v1 + EPS) * g1 + beta1, 0.0)
    y = h @ w2.astype(jnp.float32) + b2
    m2 = y.mean(0, keepdims=True)
    v2 = ((y - m2) ** 2).mean(0, keepdims=True)
    return (y - m2) / jnp.sqrt(v2 + EPS)


if __name__ == "__main__":
    # Small shapes consistent with the module (N, input_dim) -> (N, output_dim);
    # feature dims chosen as multiples of 128 (like the real 768/2048/512 defaults)
    # so stores are lane-dense.
    input_dim, hidden_dim, output_dim = 128, 256, 128

    key = jax.random.PRNGKey(0)
    kx1, kx2, kw1, kb1, kw2, kb2 = jax.random.split(key, 6)

    w1 = jax.random.normal(kw1, (input_dim, hidden_dim), jnp.float32) * 0.05
    b1 = jax.random.normal(kb1, (1, hidden_dim), jnp.float32) * 0.05
    g1 = jnp.ones((1, hidden_dim), jnp.float32)      # BatchNorm1d weight (gamma)
    beta1 = jnp.zeros((1, hidden_dim), jnp.float32)  # BatchNorm1d bias (beta)
    w2 = jax.random.normal(kw2, (hidden_dim, output_dim), jnp.float32) * 0.05
    b2 = jax.random.normal(kb2, (1, output_dim), jnp.float32) * 0.05
    # second BatchNorm1d has affine=False -> no parameters.

    # --- Path 1: fused single-call kernel (small batch, everything in VMEM). ---
    batch1 = 64
    x1 = jax.random.normal(kx1, (batch1, input_dim), dtype=jnp.float32)
    out1 = jax.block_until_ready(global_embedding(x1, w1, b1, g1, beta1, w2, b2))
    ref1 = reference(x1, w1, b1, g1, beta1, w2, b2)
    assert out1.shape == (batch1, output_dim)
    assert jnp.allclose(out1, ref1, atol=1e-4, rtol=1e-4)

    # --- Path 2: N-tiled 3-phase pipeline (forced, 4 row tiles of 64). ---
    batch2 = 256
    x2 = jax.random.normal(kx2, (batch2, input_dim), dtype=jnp.float32)
    out2 = jax.block_until_ready(
        global_embedding(x2, w1, b1, g1, beta1, w2, b2, tile_n=64, force_tiled=True))
    ref2 = reference(x2, w1, b1, g1, beta1, w2, b2)
    assert out2.shape == (batch2, output_dim)
    assert jnp.allclose(out2, ref2, atol=1e-4, rtol=1e-4)

    print("KERNEL_OK")
</pallas_src>

<mosaic_0001>
module attributes {stable_mosaic.version = 11 : i64} {
  func.func @_fused_kernel(%arg0: memref<64x128xf32, #tpu.memory_space<vmem>>, %arg1: memref<128x256xf32, #tpu.memory_space<vmem>>, %arg2: memref<1x256xf32, #tpu.memory_space<vmem>>, %arg3: memref<1x256xf32, #tpu.memory_space<vmem>>, %arg4: memref<256x128xf32, #tpu.memory_space<vmem>>, %arg5: memref<64x128xf32, #tpu.memory_space<vmem>>) attributes {dimension_semantics = [], scalar_prefetch = 0 : i64, scratch_operands = 0 : i64, tpu.core_type = #tpu.core_type<tc>} {
    %c0 = arith.constant 0 : index
    %c0_0 = arith.constant 0 : index
    %0 = vector.load %arg0[%c0, %c0_0] : memref<64x128xf32, #tpu.memory_space<vmem>>, vector<64x128xf32>
    %c0_1 = arith.constant 0 : index
    %c0_2 = arith.constant 0 : index
    %1 = vector.load %arg1[%c0_1, %c0_2] : memref<128x256xf32, #tpu.memory_space<vmem>>, vector<128x256xf32>
    %cst = arith.constant dense<0.000000e+00> : vector<64x256xf32>
    %2 = tpu.matmul %0, %1, %cst {dimension_numbers = #tpu.dot_dimension_numbers<[1], [0], [0], [1], [0, 0, 1, 1], [], []>} : vector<64x128xf32>, vector<128x256xf32>, vector<64x256xf32> -> vector<64x256xf32>
    %cst_3 = arith.constant dense<0.000000e+00> : vector<256xf32>
    %3 = vector.multi_reduction <add>, %2, %cst_3 [0] : vector<64x256xf32> to vector<256xf32>
    %4 = vector.shape_cast %3 : vector<256xf32> to vector<1x256xf32>
    %cst_4 = arith.constant 1.562500e-02 : f32
    %5 = vector.broadcast %cst_4 : f32 to vector<1x256xf32>
    %6 = arith.mulf %4, %5 : vector<1x256xf32>
    %7 = arith.mulf %2, %2 : vector<64x256xf32>
    %cst_5 = arith.constant dense<0.000000e+00> : vector<256xf32>
    %8 = vector.multi_reduction <add>, %7, %cst_5 [0] : vector<64x256xf32> to vector<256xf32>
    %9 = vector.shape_cast %8 : vector<256xf32> to vector<1x256xf32>
    %cst_6 = arith.constant 1.562500e-02 : f32
    %10 = vector.broadcast %cst_6 : f32 to vector<1x256xf32>
    %11 = arith.mulf %9, %10 : vector<1x256xf32>
    %12 = arith.mulf %6, %6 : vector<1x256xf32>
    %13 = arith.subf %11, %12 : vector<1x256xf32>
    %c0_7 = arith.constant 0 : index
    %c0_8 = arith.constant 0 : index
    %14 = vector.load %arg2[%c0_7, %c0_8] : memref<1x256xf32, #tpu.memory_space<vmem>>, vector<1x256xf32>
    %cst_9 = arith.constant 9.99999974E-6 : f32
    %15 = vector.broadcast %cst_9 : f32 to vector<1x256xf32>
    %16 = arith.addf %13, %15 : vector<1x256xf32>
    %17 = math.rsqrt %16 : vector<1x256xf32>
    %18 = arith.mulf %14, %17 : vector<1x256xf32>
    %c0_10 = arith.constant 0 : index
    %c0_11 = arith.constant 0 : index
    %19 = vector.load %arg3[%c0_10, %c0_11] : memref<1x256xf32, #tpu.memory_space<vmem>>, vector<1x256xf32>
    %20 = arith.mulf %6, %18 : vector<1x256xf32>
    %21 = arith.subf %19, %20 : vector<1x256xf32>
    %22 = vector.broadcast %18 : vector<1x256xf32> to vector<64x256xf32>
    %23 = arith.mulf %2, %22 : vector<64x256xf32>
    %24 = vector.broadcast %21 : vector<1x256xf32> to vector<64x256xf32>
    %25 = arith.addf %23, %24 : vector<64x256xf32>
    %cst_12 = arith.constant 0.000000e+00 : f32
    %26 = vector.broadcast %cst_12 : f32 to vector<64x256xf32>
    %27 = arith.maximumf %25, %26 : vector<64x256xf32>
    %c0_13 = arith.constant 0 : index
    %c0_14 = arith.constant 0 : index
    %28 = vector.load %arg4[%c0_13, %c0_14] : memref<256x128xf32, #tpu.memory_space<vmem>>, vector<256x128xf32>
    %cst_15 = arith.constant dense<0.000000e+00> : vector<64x128xf32>
    %29 = tpu.matmul %27, %28, %cst_15 {dimension_numbers = #tpu.dot_dimension_numbers<[1], [0], [0], [1], [0, 0, 1, 1], [], []>} : vector<64x256xf32>, vector<256x128xf32>, vector<64x128xf32> -> vector<64x128xf32>
    %cst_16 = arith.constant dense<0.000000e+00> : vector<128xf32>
    %30 = vector.multi_reduction <add>, %29, %cst_16 [0] : vector<64x128xf32> to vector<128xf32>
    %31 = vector.shape_cast %30 : vector<128xf32> to vector<1x128xf32>
    %cst_17 = arith.constant 1.562500e-02 : f32
    %32 = vector.broadcast %cst_17 : f32 to vector<1x128xf32>
    %33 = arith.mulf %31, %32 : vector<1x128xf32>
    %34 = arith.mulf %29, %29 : vector<64x128xf32>
    %cst_18 = arith.constant dense<0.000000e+00> : vector<128xf32>
    %35 = vector.multi_reduction <add>, %34, %cst_18 [0] : vector<64x128xf32> to vector<128xf32>
    %36 = vector.shape_cast %35 : vector<128xf32> to vector<1x128xf32>
    %cst_19 = arith.constant 1.562500e-02 : f32
    %37 = vector.broadcast %cst_19 : f32 to vector<1x128xf32>
    %38 = arith.mulf %36, %37 : vector<1x128xf32>
    %39 = arith.mulf %33, %33 : vector<1x128xf32>
    %40 = arith.subf %38, %39 : vector<1x128xf32>
    %cst_20 = arith.constant 9.99999974E-6 : f32
    %41 = vector.broadcast %cst_20 : f32 to vector<1x128xf32>
    %42 = arith.addf %40, %41 : vector<1x128xf32>
    %43 = math.rsqrt %42 : vector<1x128xf32>
    %44 = vector.broadcast %43 : vector<1x128xf32> to vector<64x128xf32>
    %45 = arith.mulf %29, %44 : vector<64x128xf32>
    %46 = arith.mulf %33, %43 : vector<1x128xf32>
    %47 = vector.broadcast %46 : vector<1x128xf32> to vector<64x128xf32>
    %48 = arith.subf %45, %47 : vector<64x128xf32>
    %c0_21 = arith.constant 0 : index
    %c0_22 = arith.constant 0 : index
    %49 = vector.load %arg5[%c0_21, %c0_22] : memref<64x128xf32, #tpu.memory_space<vmem>>, vector<64x128xf32>
    tpu.vector_store %arg5[%c0_21, %c0_22], %48 {strides = array<i32>} : memref<64x128xf32, #tpu.memory_space<vmem>>, vector<64x128xf32>,
    return
  }
}

</mosaic_0001>

<bundles_post_ra>
// kernel: tpu_custom_call.1
= control target key start
LH: loop header
LB: loop body
LE: loop exit
PB: predicated region body
PF: predicated region fallthrough
CT: control target
= control target key end

     0   :  { %10 = vsyncpa [#allocation3], 0  ;;  %s939_s0 = inlined_call_operand.hbm [shape: f32[64,128], index: 0, kind: input, shape index: {}]   ;;  %s940_s1 = inlined_call_operand.hbm [shape: f32[128,256], index: 1, kind: input, shape index: {}]   ;;  %s941_s2 = inlined_call_operand.hbm [shape: f32[1,256], index: 2, kind: input, shape index: {}]   ;;  %s942_s3 = inlined_call_operand.vmem [shape: f32[1,256], index: 3, kind: input, shape index: {}]   ;;  %s943_s4 = inlined_call_operand.hbm [shape: f32[256,128], index: 4, kind: input, shape index: {}]   ;;  %s944_s5 = inlined_call_operand.hbm [shape: f32[64,128], index: 5, kind: output, shape index: {}]  }
   0x1   :  { %11 = vsyncpa [#allocation6], 0 }
   0x2   :  { %12 = vsyncpa [#allocation9], 0  ;;  %s31_s20 = sshll.u32 %s940_s1, 4  ;;  %s32_s20 = int_to_ptr.hbm [resolvable:$true] %s31_s20 }
   0x3   :  { %13 = vsyncpa [#allocation4], 0  ;;  %s729_s21 = smov [#allocation5]   ;;  %s18_s25 = sshll.u32 %s939_s0, 4  ;;  %s19_s25 = int_to_ptr.hbm [resolvable:$true] %s18_s25 }
   0x4   :  { %s33_s22 = sshll.u32 %s729_s21, 4  ;;  %s730_s26 = smov 256   ;;  %s34_s22 = int_to_ptr.vmem [resolvable:$true] %s33_s22 }
   0x5   :  { %s731_s27 = smov 16   ;;  %s732_s28 = smov [#allocation2]  }
   0x6   :  { %39 = dma.hbm_to_vmem [thread:$0]  %s32_s20, 4096, %s34_s22, [#allocation6], %s730_s26, %s730_s26, %s731_s27  }
   0x7   :  { %s20_s29 = sshll.u32 %s732_s28, 4  ;;  %s733_s30 = smov 128   ;;  %s21_s29 = int_to_ptr.vmem [resolvable:$true] %s20_s29 }
   0x8   :  { %s734_s6 = smov 8   ;;  %s45_s8 = sshll.u32 %s941_s2, 4  ;;  %s46_s8 = int_to_ptr.hbm [resolvable:$true] %s45_s8 }
   0x9   :  { %26 = dma.hbm_to_vmem [thread:$0]  %s19_s25, 1024, %s21_s29, [#allocation3], %s733_s30, %s733_s30, %s734_s6  }
   0xa   :  { %s735_s9 = smov [#allocation7]   ;;  %s57_s12 = sshll.u32 %s943_s4, 4  ;;  %s58_s12 = int_to_ptr.hbm [resolvable:$true] %s57_s12 }
   0xb   :  { %s47_s0 = sshll.u32 %s735_s9, 4  ;;  %s736_s13 = smov [#allocation8]   ;;  %s48_s0 = int_to_ptr.vmem [resolvable:$true] %s47_s0 }
   0xc   :  { %50 = dma.hbm_to_vmem [thread:$0]  %s46_s8, 32, %s48_s0, [#allocation6]  }
   0xd   :  { %s59_s14 = sshll.u32 %s736_s13, 4  ;;  %s60_s14 = int_to_ptr.vmem [resolvable:$true] %s59_s14 }
   0xe   :  { %65 = dma.hbm_to_vmem [thread:$0]  %s58_s12, 4096, %s60_s14, [#allocation9], %s733_s30, %s733_s30, %s734_s6  }
   0xf   :  { %721 = dma.done.wait [#allocation3], 1024  }
  0x10   :  { %722 = vsyncadd [#allocation3], 4294966272 }
  0x11   :  { %723 = dma.done.wait [#allocation6], 4128  }
  0x12   :  { %724 = vsyncadd [#allocation6], 4294963168 }
  0x13   :  { %725 = dma.done.wait [#allocation9], 4096  }
  0x14   :  { %726 = vsyncadd [#allocation9], 4294963200  ;;  %v120_v0 = vld [vmem:[#allocation5 + $0xf0] sm:$0xff]  ;;  %v121_v1 = vld [vmem:[#allocation5 + $0xf8] sm:$0xff]  ;;  %vm306_vm5 = vcmask 1040384   ;;  %s571_s18 = sshll.u32 %s944_s5, 4  ;;  %s572_s18 = int_to_ptr.hbm [resolvable:$true] %s571_s18 }
  0x15   :  { %v118_v2 = vld [vmem:[#allocation5 + $0xe0] sm:$0xff]  ;;  %122 = vmatpush.msra.mxu0 %v120_v0  ;;  %163 = vmatpush.msra.mxu1 %v121_v1  ;;  %v119_v3 = vld [vmem:[#allocation5 + $0xe8] sm:$0xff]  ;;  %v116_v4 = vld [vmem:[#allocation5 + $0xd0] sm:$0xff] }
  0x16   :  { %v117_v5 = vld [vmem:[#allocation5 + $0xd8] sm:$0xff]  ;;  %v114_v6 = vld [vmem:[#allocation5 + $0xc0] sm:$0xff]  ;;  %v115_v7 = vld [vmem:[#allocation5 + $0xc8] sm:$0xff] }
  0x17   :  { %123 = vmatpush.msra.mxu0 %v118_v2  ;;  %164 = vmatpush.msra.mxu1 %v119_v3  ;;  %v112_v8 = vld [vmem:[#allocation5 + $0xb0] sm:$0xff]  ;;  %v113_v9 = vld [vmem:[#allocation5 + $0xb8] sm:$0xff]  ;;  %v110_v10 = vld [vmem:[#allocation5 + $0xa0] sm:$0xff] }
  0x18   :  { %v111_v11 = vld [vmem:[#allocation5 + $0xa8] sm:$0xff]  ;;  %v108_v12 = vld [vmem:[#allocation5 + $0x90] sm:$0xff]  ;;  %v109_v13 = vld [vmem:[#allocation5 + $0x98] sm:$0xff] }
  0x19   :  { %124 = vmatpush.msra.mxu0 %v116_v4  ;;  %165 = vmatpush.msra.mxu1 %v117_v5  ;;  %v106_v14 = vld [vmem:[#allocation5 + $0x80] sm:$0xff]  ;;  %v107_v15 = vld [vmem:[#allocation5 + $0x88] sm:$0xff]  ;;  %v104_v16 = vld [vmem:[#allocation5 + $0x70] sm:$0xff] }
  0x1a   :  { %v105_v17 = vld [vmem:[#allocation5 + $0x78] sm:$0xff]  ;;  %v102_v18 = vld [vmem:[#allocation5 + $0x60] sm:$0xff]  ;;  %v103_v19 = vld [vmem:[#allocation5 + $0x68] sm:$0xff] }
  0x1b   :  { %125 = vmatpush.msra.mxu0 %v114_v6  ;;  %166 = vmatpush.msra.mxu1 %v115_v7  ;;  %v100_v20 = vld [vmem:[#allocation5 + $0x50] sm:$0xff]  ;;  %v101_v21 = vld [vmem:[#allocation5 + $0x58] sm:$0xff]  ;;  %v98_v22 = vld [vmem:[#allocation5 + $0x40] sm:$0xff] }
  0x1c   :  { %v99_v23 = vld [vmem:[#allocation5 + $0x48] sm:$0xff]  ;;  %v96_v24 = vld [vmem:[#allocation5 + $0x30] sm:$0xff]  ;;  %v97_v25 = vld [vmem:[#allocation5 + $0x38] sm:$0xff] }
  0x1d   :  { %126 = vmatpush.msra.mxu0 %v112_v8  ;;  %167 = vmatpush.msra.mxu1 %v113_v9  ;;  %v94_v26 = vld [vmem:[#allocation5 + $0x20] sm:$0xff]  ;;  %v95_v27 = vld [vmem:[#allocation5 + $0x28] sm:$0xff]  ;;  %v92_v28 = vld [vmem:[#allocation5 + $0x10] sm:$0xff] }
  0x1e   :  { %v93_v29 = vld [vmem:[#allocation5 + $0x18] sm:$0xff]  ;;  %v90_v30 = vld [vmem:[#allocation5] sm:$0xff]  ;;  %v91_v31 = vld [vmem:[#allocation5 + $0x8] sm:$0xff] }
  0x1f   :  { %127 = vmatpush.msra.mxu0 %v110_v10  ;;  %168 = vmatpush.msra.mxu1 %v111_v11  ;;  %v82_v32 = vld [vmem:[#allocation2] sm:$0xff]  ;;  %v83_v33 = vld [vmem:[#allocation2 + $0x8] sm:$0xff]  ;;  %v84_v34 = vld [vmem:[#allocation2 + $0x10] sm:$0xff] }
  0x20   :  { %v85_v35 = vld [vmem:[#allocation2 + $0x18] sm:$0xff]  ;;  %v86_v36 = vld [vmem:[#allocation2 + $0x20] sm:$0xff]  ;;  %v87_v37 = vld [vmem:[#allocation2 + $0x28] sm:$0xff] }
  0x21   :  { %128 = vmatpush.msra.mxu0 %v108_v12  ;;  %169 = vmatpush.msra.mxu1 %v109_v13  ;;  %v88_v38 = vld [vmem:[#allocation2 + $0x30] sm:$0xff]  ;;  %v89_v39 = vld [vmem:[#allocation2 + $0x38] sm:$0xff] }
  0x23   :  { %129 = vmatpush.msra.mxu0 %v106_v14  ;;  %170 = vmatpush.msra.mxu1 %v107_v15 }
  0x25   :  { %130 = vmatpush.msra.mxu0 %v104_v16  ;;  %171 = vmatpush.msra.mxu1 %v105_v17 }
  0x27   :  { %131 = vmatpush.msra.mxu0 %v102_v18  ;;  %172 = vmatpush.msra.mxu1 %v103_v19 }
  0x29   :  { %132 = vmatpush.msra.mxu0 %v100_v20  ;;  %173 = vmatpush.msra.mxu1 %v101_v21 }
  0x2b   :  { %133 = vmatpush.msra.mxu0 %v98_v22  ;;  %174 = vmatpush.msra.mxu1 %v99_v23 }
  0x2d   :  { %134 = vmatpush.msra.mxu0 %v96_v24  ;;  %175 = vmatpush.msra.mxu1 %v97_v25  ;;  %v392_v24 = vld [vmem:[#allocation8 + $0x78] sm:$0xff] }
  0x2e   :  { %v408_v25 = vld [vmem:[#allocation8 + $0xf8] sm:$0xff]  ;;  %409 = vmatpush.msra.mxu2 %v392_v24 }
  0x2f   :  { %135 = vmatpush.msra.mxu0 %v94_v26  ;;  %176 = vmatpush.msra.mxu1 %v95_v27  ;;  %v384_v24 = vld [vmem:[#allocation8 + $0x38] sm:$0xff] }
  0x30   :  { %450 = vmatpush.msra.mxu3 %v408_v25  ;;  %v400_v25 = vld [vmem:[#allocation8 + $0xb8] sm:$0xff] }
  0x31   :  { %136 = vmatpush.msra.mxu0 %v92_v28  ;;  %177 = vmatpush.msra.mxu1 %v93_v29 }
  0x33   :  { %137 = vmatpush.msra.mxu0 %v90_v30  ;;  %178 = vmatpush.msra.mxu1 %v91_v31 }
  0x34   :  { %138 = vmatmul.f32.vlgmr.msra.gmra.mxu0 %v82_v32  ;;  %179 = vmatmul.f32.vlgmr.msra.gmra.mxu1 %v82_v32  ;;  %v391_v32 = vld [vmem:[#allocation8 + $0x70] sm:$0xff] }
  0x35   :  { %410 = vmatpush.msra.mxu2 %v391_v32  ;;  %v383_v32 = vld [vmem:[#allocation8 + $0x30] sm:$0xff] }
  0x3c   :  { %141 = vmatmul.f32.gmra.mxu0 %v83_v33  ;;  %182 = vmatmul.f32.gmra.mxu1 %v83_v33  ;;  %v407_v33 = vld [vmem:[#allocation8 + $0xf0] sm:$0xff] }
  0x3d   :  { %451 = vmatpush.msra.mxu3 %v407_v33  ;;  %v399_v33 = vld [vmem:[#allocation8 + $0xb0] sm:$0xff] }
  0x44   :  { %144 = vmatmul.f32.gmra.mxu0 %v84_v34  ;;  %185 = vmatmul.f32.gmra.mxu1 %v84_v34 }
  0x4c   :  { %147 = vmatmul.f32.gmra.mxu0 %v85_v35  ;;  %188 = vmatmul.f32.gmra.mxu1 %v85_v35 }
  0x54   :  { %150 = vmatmul.f32.gmra.mxu0 %v86_v36  ;;  %191 = vmatmul.f32.gmra.mxu1 %v86_v36 }
  0x5c   :  { %153 = vmatmul.f32.gmra.mxu0 %v87_v37  ;;  %194 = vmatmul.f32.gmra.mxu1 %v87_v37 }
  0x64   :  { %156 = vmatmul.f32.gmra.mxu0 %v88_v38  ;;  %197 = vmatmul.f32.gmra.mxu1 %v88_v38  ;;  %v390_v38 = vld [vmem:[#allocation8 + $0x68] sm:$0xff] }
  0x65   :  { %411 = vmatpush.msra.mxu2 %v390_v38  ;;  %v382_v38 = vld [vmem:[#allocation8 + $0x28] sm:$0xff] }
  0x6c   :  { %159 = vmatmul.f32.gmra.mxu0 %v89_v39  ;;  %200 = vmatmul.f32.gmra.mxu1 %v89_v39  ;;  %v406_v39 = vld [vmem:[#allocation8 + $0xe8] sm:$0xff] }
  0x6d   :  { %452 = vmatpush.msra.mxu3 %v406_v39  ;;  %v398_v39 = vld [vmem:[#allocation8 + $0xa8] sm:$0xff] }
  0xb1   :  { %v786_v40 = vpop.f32.mrf.mxu0  ;;  %v788_v41 = vpop.f32.mrf.mxu1 }
  0xb2   :  { %v232_v54 = vmul.f32 %v786_v40, %v786_v40  ;;  %v233_v55 = vmul.f32 %v788_v41, %v788_v41 }
  0xb9   :  { %v790_v42 = vpop.f32.mrf.mxu0  ;;  %v792_v43 = vpop.f32.mrf.mxu1 }
  0xba   :  { %v234_v52 = vmul.f32 %v790_v42, %v790_v42  ;;  %v235_v53 = vmul.f32 %v792_v43, %v792_v43  ;;  %v204_v58 = vadd.f32 %v790_v42, %v786_v40  ;;  %v217_v59 = vadd.f32 %v792_v43, %v788_v41 }
  0xbc   :  { %v248_v60 = vadd.f32 %v234_v52, %v232_v54  ;;  %v261_v61 = vadd.f32 %v235_v53, %v233_v55 }
  0xc1   :  { %v794_v44 = vpop.f32.mrf.mxu0  ;;  %v796_v45 = vpop.f32.mrf.mxu1 }
  0xc2   :  { %v236_v56 = vmul.f32 %v794_v44, %v794_v44  ;;  %v237_v57 = vmul.f32 %v796_v45, %v796_v45  ;;  %v205_v0 = vadd.f32 %v204_v58, %v794_v44  ;;  %v218_v1 = vadd.f32 %v217_v59, %v796_v45 }
  0xc4   :  { %v249_v2 = vadd.f32 %v248_v60, %v236_v56  ;;  %v262_v3 = vadd.f32 %v261_v61, %v237_v57  ;;  %v389_v56 = vld [vmem:[#allocation8 + $0x60] sm:$0xff] }
  0xc5   :  { %v405_v57 = vld [vmem:[#allocation8 + $0xe0] sm:$0xff]  ;;  %412 = vmatpush.msra.mxu2 %v389_v56 }
  0xc6   :  { %453 = vmatpush.msra.mxu3 %v405_v57 }
  0xc9   :  { %v798_v46 = vpop.f32.mrf.mxu0  ;;  %v800_v47 = vpop.f32.mrf.mxu1 }
  0xca   :  { %v238_v62 = vmul.f32 %v798_v46, %v798_v46  ;;  %v239_v63 = vmul.f32 %v800_v47, %v800_v47  ;;  %v206_v8 = vadd.f32 %v205_v0, %v798_v46  ;;  %v219_v9 = vadd.f32 %v218_v1, %v800_v47 }
  0xcc   :  { %v250_v10 = vadd.f32 %v249_v2, %v238_v62  ;;  %v263_v11 = vadd.f32 %v262_v3, %v239_v63  ;;  %v388_v62 = vld [vmem:[#allocation8 + $0x58] sm:$0xff] }
  0xcd   :  { %v404_v63 = vld [vmem:[#allocation8 + $0xd8] sm:$0xff]  ;;  %413 = vmatpush.msra.mxu2 %v388_v62  ;;  %v378_v62 = vld [vmem:[#allocation8 + $0x8] sm:$0xff] }
  0xce   :  { %454 = vmatpush.msra.mxu3 %v404_v63  ;;  %v394_v63 = vld [vmem:[#allocation8 + $0x88] sm:$0xff] }
  0xd1   :  { %v802_v48 = vpop.f32.mrf.mxu0  ;;  %v804_v49 = vpop.f32.mrf.mxu1 }
  0xd2   :  { %v240_v4 = vmul.f32 %v802_v48, %v802_v48  ;;  %v241_v5 = vmul.f32 %v804_v49, %v804_v49  ;;  %v207_v14 = vadd.f32 %v206_v8, %v802_v48  ;;  %v220_v15 = vadd.f32 %v219_v9, %v804_v49 }
  0xd4   :  { %v251_v16 = vadd.f32 %v250_v10, %v240_v4  ;;  %v264_v17 = vadd.f32 %v263_v11, %v241_v5  ;;  %v387_v4 = vld [vmem:[#allocation8 + $0x50] sm:$0xff] }
  0xd5   :  { %v403_v5 = vld [vmem:[#allocation8 + $0xd0] sm:$0xff]  ;;  %414 = vmatpush.msra.mxu2 %v387_v4 }
  0xd6   :  { %455 = vmatpush.msra.mxu3 %v403_v5 }
  0xd9   :  { %v806_v50 = vpop.f32.mrf.mxu0  ;;  %v808_v51 = vpop.f32.mrf.mxu1 }
  0xda   :  { %v242_v12 = vmul.f32 %v806_v50, %v806_v50  ;;  %v243_v13 = vmul.f32 %v808_v51, %v808_v51  ;;  %v208_v20 = vadd.f32 %v207_v14, %v806_v50  ;;  %v221_v21 = vadd.f32 %v220_v15, %v808_v51 }
  0xdc   :  { %v252_v22 = vadd.f32 %v251_v16, %v242_v12  ;;  %v265_v23 = vadd.f32 %v264_v17, %v243_v13  ;;  %v386_v12 = vld [vmem:[#allocation8 + $0x48] sm:$0xff] }
  0xdd   :  { %v402_v13 = vld [vmem:[#allocation8 + $0xc8] sm:$0xff]  ;;  %415 = vmatpush.msra.mxu2 %v386_v12 }
  0xde   :  { %456 = vmatpush.msra.mxu3 %v402_v13 }
  0xe1   :  { %v836_v6 = vpop.f32.mrf.mxu0  ;;  %v838_v7 = vpop.f32.mrf.mxu1 }
  0xe2   :  { %v244_v18 = vmul.f32 %v836_v6, %v836_v6  ;;  %v245_v19 = vmul.f32 %v838_v7, %v838_v7  ;;  %v209_v26 = vadd.f32 %v208_v20, %v836_v6  ;;  %v222_v27 = vadd.f32 %v221_v21, %v838_v7 }
  0xe4   :  { %v253_v28 = vadd.f32 %v252_v22, %v244_v18  ;;  %v266_v29 = vadd.f32 %v265_v23, %v245_v19  ;;  %v385_v18 = vld [vmem:[#allocation8 + $0x40] sm:$0xff] }
  0xe5   :  { %v401_v19 = vld [vmem:[#allocation8 + $0xc0] sm:$0xff]  ;;  %416 = vmatpush.msra.mxu2 %v385_v18 }
  0xe6   :  { %457 = vmatpush.msra.mxu3 %v401_v19 }
  0xe7   :  { %417 = vmatpush.msra.mxu2 %v384_v24 }
  0xe8   :  { %458 = vmatpush.msra.mxu3 %v400_v25 }
  0xe9   :  { %v856_v30 = vpop.f32.mrf.mxu0  ;;  %v858_v31 = vpop.f32.mrf.mxu1  ;;  %418 = vmatpush.msra.mxu2 %v383_v32 }
  0xea   :  { %v210_v34 = vadd.f32 %v209_v26, %v856_v30  ;;  %v246_v35 = vmul.f32 %v856_v30, %v856_v30  ;;  %v223_v36 = vadd.f32 %v222_v27, %v858_v31  ;;  %v247_v37 = vmul.f32 %v858_v31, %v858_v31  ;;  %459 = vmatpush.msra.mxu3 %v399_v33 }
  0xeb   :  { %419 = vmatpush.msra.mxu2 %v382_v38 }
  0xec   :  { %v211_v52 = vrot.slane %v210_v34, 4  ;;  %v254_v53 = vadd.f32 %v253_v28, %v246_v35  ;;  %v224_v54 = vrot.slane %v223_v36, 4  ;;  %v267_v55 = vadd.f32 %v266_v29, %v247_v37  ;;  %460 = vmatpush.msra.mxu3 %v398_v39 }
  0xee   :  { %v212_v58 = vadd.f32 %v211_v52, %v210_v34  ;;  %v255_v59 = vrot.slane %v254_v53, 4  ;;  %v225_v60 = vadd.f32 %v224_v54, %v223_v36  ;;  %v268_v61 = vrot.slane %v267_v55, 4  ;;  %v381_v54 = vld [vmem:[#allocation8 + $0x20] sm:$0xff] }
  0xef   :  { %420 = vmatpush.msra.mxu2 %v381_v54 }
  0xf0   :  { %v213_v0 = vrot.slane %v212_v58, 2  ;;  %v256_v1 = vadd.f32 %v255_v59, %v254_v53  ;;  %v226_v2 = vrot.slane %v225_v60, 2  ;;  %v269_v3 = vadd.f32 %v268_v61, %v267_v55  ;;  %v397_v55 = vld [vmem:[#allocation8 + $0xa0] sm:$0xff]  ;;  %v396_v59 = vld [vmem:[#allocation8 + $0x98] sm:$0xff]  ;;  %v395_v61 = vld [vmem:[#allocation8 + $0x90] sm:$0xff] }
  0xf1   :  { %461 = vmatpush.msra.mxu3 %v397_v55 }
  0xf2   :  { %v214_v8 = vadd.f32 %v213_v0, %v212_v58  ;;  %v257_v9 = vrot.slane %v256_v1, 2  ;;  %v227_v10 = vadd.f32 %v226_v2, %v225_v60  ;;  %v270_v11 = vrot.slane %v269_v3, 2  ;;  %v380_v58 = vld [vmem:[#allocation8 + $0x18] sm:$0xff]  ;;  %v379_v60 = vld [vmem:[#allocation8 + $0x10] sm:$0xff]  ;;  %v377_v0 = vld [vmem:[#allocation8] sm:$0xff] }
  0xf3   :  { %421 = vmatpush.msra.mxu2 %v380_v58  ;;  %462 = vmatpush.msra.mxu3 %v396_v59 }
  0xf4   :  { %v215_v14 = vrot.slane %v214_v8, 1  ;;  %v258_v15 = vadd.f32 %v257_v9, %v256_v1  ;;  %v228_v16 = vrot.slane %v227_v10, 1  ;;  %v271_v17 = vadd.f32 %v270_v11, %v269_v3  ;;  %v393_v1 = vld [vmem:[#allocation8 + $0x80] sm:$0xff] }
  0xf5   :  { %422 = vmatpush.msra.mxu2 %v379_v60  ;;  %463 = vmatpush.msra.mxu3 %v395_v61 }
  0xf6   :  { %v216_v20 = vadd.f32 %v215_v14, %v214_v8  ;;  %v259_v21 = vrot.slane %v258_v15, 1  ;;  %v229_v22 = vadd.f32 %v228_v16, %v227_v10  ;;  %v272_v23 = vrot.slane %v271_v17, 1 }
  0xf7   :  { %423 = vmatpush.msra.mxu2 %v378_v62  ;;  %464 = vmatpush.msra.mxu3 %v394_v63 }
  0xf8   :  { %v866_v26 = vmul.f32 0.015625, %v216_v20  ;;  %v260_v27 = vadd.f32 %v259_v21, %v258_v15  ;;  %v868_v28 = vmul.f32 0.015625, %v229_v22  ;;  %v273_v29 = vadd.f32 %v272_v23, %v271_v17  ;;  %v280_v17 = vld [vmem:[#allocation7] sm:$0x3] }
  0xf9   :  { %424 = vmatpush.msra.mxu2 %v377_v0  ;;  %465 = vmatpush.msra.mxu3 %v393_v1 }
  0xfa   :  { %v274_v34 = vmul.f32 0.015625, %v260_v27  ;;  %v276_v35 = vmul.f32 %v866_v26, %v866_v26  ;;  %v275_v36 = vmul.f32 0.015625, %v273_v29  ;;  %v277_v37 = vmul.f32 %v868_v28, %v868_v28  ;;  %v310_v27 = vld [vmem:[%s942_s3] sm:$0x3]  ;;  %s737_s3 = smov [#allocation10]  }
  0xfb   :  { %s569_s15 = sshll.u32 %s737_s3, 4  ;;  %s570_s15 = int_to_ptr.vmem [resolvable:$true] %s569_s15 }
  0xfc   :  { %v278_v52 = vsub.f32 %v274_v34, %v276_v35  ;;  %v279_v53 = vsub.f32 %v275_v36, %v277_v37 }
  0xfe   :  { %v281_v56 = vadd.f32 1e-05, %v278_v52  ;;  %v282_v57 = vadd.f32 1e-05, %v279_v53 }
 0x100   :  { %595 = vrsqrt.f32 %v281_v56  ;;  %vm299_vm2 = vweird.f32 %v282_v57  ;;  %vm289_vm4 = vweird.f32 %v281_v56 }
 0x101   :  { %597 = vrsqrt.f32 %v282_v57 }
 0x106   :  { %v596_v2 = vpop.eup %595 }
 0x107   :  { %v598_v3 = vpop.eup %597  ;;  %v284_v4 = vmul.f32 %v596_v2, %v281_v56  ;;  %vm290_vm1 = vweird.f32 %v596_v2 }
 0x108   :  { %v294_v5 = vmul.f32 %v598_v3, %v282_v57  ;;  %vm300_vm0 = vweird.f32 %v598_v3  ;;  %vm291_vm6 = vmor %vm289_vm4, %vm290_vm1 }
 0x109   :  { %v285_v8 = vmul.f32 %v596_v2, %v284_v4  ;;  %vm301_vm3 = vmor %vm299_vm2, %vm300_vm0 }
 0x10a   :  { %v295_v9 = vmul.f32 %v598_v3, %v294_v5 }
 0x10b   :  { %v286_v10 = vmul.f32 0.5, %v285_v8 }
 0x10c   :  { %v296_v11 = vmul.f32 0.5, %v295_v9 }
 0x10d   :  { %v287_v12 = vsub.f32 1.5, %v286_v10 }
 0x10e   :  { %v297_v13 = vsub.f32 1.5, %v296_v11 }
 0x10f   :  { %v288_v14 = vmul.f32 %v596_v2, %v287_v12 }
 0x110   :  { %v298_v15 = vmul.f32 %v598_v3, %v297_v13 }
 0x111   :  { %v292_v19 = vsel %vm291_vm6, %v596_v2, %v288_v14 }
 0x112   :  { %v302_v16 = vsel %vm301_vm3, %v598_v3, %v298_v15 }
 0x113   :  { %v305_v18 = vrot.slane %v302_v16, 7 }
 0x115   :  { %v307_v20 = vsel %vm306_vm5, %v292_v19, %v305_v18 }
 0x116   :  { %v309_v21 = vmul.f32 %v307_v20, %v280_v17 }
 0x118   :  { %v874_v22 = vperm.slane %v309_v21, 0  ;;  %v313_v23 = vperm.slane %v309_v21, 1 }
 0x11a   :  { %v317_v24 = vmul.f32 %v313_v23, %v868_v28  ;;  %v878_v25 = vmul.f32 %v313_v23, %v858_v31  ;;  %v316_v29 = vmul.f32 %v874_v22, %v866_v26  ;;  %v324_v37 = vmul.f32 %v874_v22, %v786_v40 }
 0x11b   :  { %v325_v28 = vmul.f32 %v313_v23, %v788_v41  ;;  %v326_v53 = vmul.f32 %v874_v22, %v790_v42  ;;  %v327_v26 = vmul.f32 %v313_v23, %v792_v43  ;;  %v328_v40 = vmul.f32 %v874_v22, %v794_v44 }
 0x11c   :  { %v320_v32 = vrot.slane %v317_v24, 7  ;;  %v329_v41 = vmul.f32 %v313_v23, %v796_v45  ;;  %v330_v42 = vmul.f32 %v874_v22, %v798_v46  ;;  %v331_v43 = vmul.f32 %v313_v23, %v800_v47 }
 0x11d   :  { %v332_v44 = vmul.f32 %v874_v22, %v802_v48  ;;  %v333_v45 = vmul.f32 %v313_v23, %v804_v49  ;;  %v334_v46 = vmul.f32 %v874_v22, %v806_v50  ;;  %v335_v47 = vmul.f32 %v313_v23, %v808_v51 }
 0x11e   :  { %v321_v33 = vsel %vm306_vm5, %v316_v29, %v320_v32  ;;  %v336_v48 = vmul.f32 %v874_v22, %v836_v6  ;;  %v337_v49 = vmul.f32 %v313_v23, %v838_v7  ;;  %v338_v50 = vmul.f32 %v874_v22, %v856_v30 }
 0x11f   :  { %v323_v34 = vsub.f32 %v310_v27, %v321_v33 }
 0x121   :  { %v341_v35 = vperm.slane %v323_v34, 0  ;;  %v342_v36 = vperm.slane %v323_v34, 1 }
 0x123   :  { %v345_v38 = vadd.f32 %v341_v35, %v324_v37  ;;  %v346_v31 = vadd.f32 %v342_v36, %v325_v28  ;;  %v347_v54 = vadd.f32 %v341_v35, %v326_v53  ;;  %v348_v55 = vadd.f32 %v342_v36, %v327_v26 }
 0x124   :  { %v349_v58 = vadd.f32 %v341_v35, %v328_v40  ;;  %v350_v59 = vadd.f32 %v342_v36, %v329_v41  ;;  %v351_v62 = vadd.f32 %v341_v35, %v330_v42  ;;  %v352_v63 = vadd.f32 %v342_v36, %v331_v43 }
 0x125   :  { %v361_v39 = vmax.f32 %v345_v38, 0.0  ;;  %v362_v52 = vmax.f32 %v346_v31, 0.0  ;;  %v363_v56 = vmax.f32 %v347_v54, 0.0  ;;  %v364_v57 = vmax.f32 %v348_v55, 0.0 }
 0x126   :  { %v365_v60 = vmax.f32 %v349_v58, 0.0  ;;  %v366_v61 = vmax.f32 %v350_v59, 0.0  ;;  %v367_v0 = vmax.f32 %v351_v62, 0.0  ;;  %v368_v1 = vmax.f32 %v352_v63, 0.0 }
 0x127   :  { %425 = vmatmul.f32.vlgmr.msra.gmra.mxu2 %v361_v39  ;;  %466 = vmatmul.f32.vlgmr.msra.gmra.mxu3 %v362_v52  ;;  %v353_v2 = vadd.f32 %v341_v35, %v332_v44  ;;  %v354_v3 = vadd.f32 %v342_v36, %v333_v45  ;;  %v355_v8 = vadd.f32 %v341_v35, %v334_v46 }
 0x128   :  { %v356_v9 = vadd.f32 %v342_v36, %v335_v47  ;;  %v357_v12 = vadd.f32 %v341_v35, %v336_v48  ;;  %v358_v13 = vadd.f32 %v342_v36, %v337_v49  ;;  %v359_v51 = vadd.f32 %v341_v35, %v338_v50 }
 0x129   :  { %v369_v4 = vmax.f32 %v353_v2, 0.0  ;;  %v370_v5 = vmax.f32 %v354_v3, 0.0  ;;  %v371_v10 = vmax.f32 %v355_v8, 0.0  ;;  %v360_v16 = vadd.f32 %v342_v36, %v878_v25 }
 0x12a   :  { %v372_v11 = vmax.f32 %v356_v9, 0.0  ;;  %v373_v14 = vmax.f32 %v357_v12, 0.0  ;;  %v374_v15 = vmax.f32 %v358_v13, 0.0  ;;  %v375_v17 = vmax.f32 %v359_v51, 0.0 }
 0x12b   :  { %v376_v18 = vmax.f32 %v360_v16, 0.0 }
 0x12f   :  { %428 = vmatmul.f32.gmra.mxu2 %v363_v56  ;;  %469 = vmatmul.f32.gmra.mxu3 %v364_v57 }
 0x137   :  { %431 = vmatmul.f32.gmra.mxu2 %v365_v60  ;;  %472 = vmatmul.f32.gmra.mxu3 %v366_v61 }
 0x13f   :  { %434 = vmatmul.f32.gmra.mxu2 %v367_v0  ;;  %475 = vmatmul.f32.gmra.mxu3 %v368_v1 }
 0x147   :  { %437 = vmatmul.f32.gmra.mxu2 %v369_v4  ;;  %478 = vmatmul.f32.gmra.mxu3 %v370_v5 }
 0x14f   :  { %440 = vmatmul.f32.gmra.mxu2 %v371_v10  ;;  %481 = vmatmul.f32.gmra.mxu3 %v372_v11 }
 0x157   :  { %443 = vmatmul.f32.gmra.mxu2 %v373_v14  ;;  %484 = vmatmul.f32.gmra.mxu3 %v374_v15 }
 0x15f   :  { %446 = vmatmul.f32.gmra.mxu2 %v375_v17  ;;  %487 = vmatmul.f32.gmra.mxu3 %v376_v18 }
 0x1aa   :  { %v426_v19 = vpop.f32.mrf.mxu2  ;;  %v467_v6 = vpop.f32.mrf.mxu3 }
 0x1ab   :  { %v911_v22 = vadd.f32 %v467_v6, %v426_v19 }
 0x1ad   :  { %v505_v37 = vmul.f32 %v911_v22, %v911_v22 }
 0x1b2   :  { %v429_v20 = vpop.f32.mrf.mxu2  ;;  %v470_v7 = vpop.f32.mrf.mxu3 }
 0x1b3   :  { %v909_v30 = vadd.f32 %v470_v7, %v429_v20 }
 0x1b5   :  { %v506_v35 = vmul.f32 %v909_v30, %v909_v30  ;;  %v491_v28 = vadd.f32 %v909_v30, %v911_v22 }
 0x1b7   :  { %v513_v53 = vadd.f32 %v506_v35, %v505_v37 }
 0x1ba   :  { %v432_v21 = vpop.f32.mrf.mxu2  ;;  %v473_v23 = vpop.f32.mrf.mxu3 }
 0x1bb   :  { %v913_v25 = vadd.f32 %v473_v23, %v432_v21 }
 0x1bd   :  { %v507_v38 = vmul.f32 %v913_v25, %v913_v25  ;;  %v492_v26 = vadd.f32 %v491_v28, %v913_v25 }
 0x1bf   :  { %v514_v56 = vadd.f32 %v513_v53, %v507_v38 }
 0x1c2   :  { %v435_v24 = vpop.f32.mrf.mxu2  ;;  %v476_v27 = vpop.f32.mrf.mxu3 }
 0x1c3   :  { %v917_v36 = vadd.f32 %v476_v27, %v435_v24 }
 0x1c5   :  { %v508_v54 = vmul.f32 %v917_v36, %v917_v36  ;;  %v493_v57 = vadd.f32 %v492_v26, %v917_v36 }
 0x1c7   :  { %v515_v58 = vadd.f32 %v514_v56, %v508_v54 }
 0x1ca   :  { %v438_v29 = vpop.f32.mrf.mxu2  ;;  %v479_v32 = vpop.f32.mrf.mxu3 }
 0x1cb   :  { %v480_v31 = vadd.f32 %v479_v32, %v438_v29 }
 0x1cd   :  { %v509_v40 = vmul.f32 %v480_v31, %v480_v31  ;;  %v494_v59 = vadd.f32 %v493_v57, %v480_v31 }
 0x1cf   :  { %v516_v61 = vadd.f32 %v515_v58, %v509_v40 }
 0x1d2   :  { %v441_v33 = vpop.f32.mrf.mxu2  ;;  %v482_v34 = vpop.f32.mrf.mxu3 }
 0x1d3   :  { %v483_v55 = vadd.f32 %v482_v34, %v441_v33 }
 0x1d5   :  { %v510_v60 = vmul.f32 %v483_v55, %v483_v55  ;;  %v495_v42 = vadd.f32 %v494_v59, %v483_v55 }
 0x1d7   :  { %v517_v0 = vadd.f32 %v516_v61, %v510_v60 }
 0x1da   :  { %v444_v39 = vpop.f32.mrf.mxu2  ;;  %v485_v52 = vpop.f32.mrf.mxu3 }
 0x1db   :  { %v486_v41 = vadd.f32 %v485_v52, %v444_v39 }
 0x1dd   :  { %v511_v43 = vmul.f32 %v486_v41, %v486_v41  ;;  %v496_v1 = vadd.f32 %v495_v42, %v486_v41 }
 0x1df   :  { %v518_v45 = vadd.f32 %v517_v0, %v511_v43 }
 0x1e2   :  { %v447_v62 = vpop.f32.mrf.mxu2  ;;  %v488_v63 = vpop.f32.mrf.mxu3 }
 0x1e3   :  { %v489_v44 = vadd.f32 %v488_v63, %v447_v62 }
 0x1e5   :  { %v497_v2 = vadd.f32 %v496_v1, %v489_v44  ;;  %v512_v3 = vmul.f32 %v489_v44, %v489_v44 }
 0x1e7   :  { %v498_v4 = vrot.slane %v497_v2, 4  ;;  %v519_v5 = vadd.f32 %v518_v45, %v512_v3 }
 0x1e9   :  { %v499_v46 = vadd.f32 %v498_v4, %v497_v2  ;;  %v520_v47 = vrot.slane %v519_v5, 4 }
 0x1eb   :  { %v500_v8 = vrot.slane %v499_v46, 2  ;;  %v521_v9 = vadd.f32 %v520_v47, %v519_v5 }
 0x1ed   :  { %v501_v10 = vadd.f32 %v500_v8, %v499_v46  ;;  %v522_v11 = vrot.slane %v521_v9, 2 }
 0x1ef   :  { %v502_v48 = vrot.slane %v501_v10, 1  ;;  %v523_v49 = vadd.f32 %v522_v11, %v521_v9 }
 0x1f1   :  { %v503_v12 = vadd.f32 %v502_v48, %v501_v10  ;;  %v524_v13 = vrot.slane %v523_v49, 1 }
 0x1f3   :  { %v504_v14 = vmul.f32 0.015625, %v503_v12  ;;  %v525_v15 = vadd.f32 %v524_v13, %v523_v49 }
 0x1f5   :  { %v526_v50 = vmul.f32 0.015625, %v525_v15  ;;  %v527_v51 = vmul.f32 %v504_v14, %v504_v14 }
 0x1f7   :  { %v528_v16 = vsub.f32 %v526_v50, %v527_v51 }
 0x1f9   :  { %v529_v17 = vadd.f32 1e-05, %v528_v16 }
 0x1fb   :  { %599 = vrsqrt.f32 %v529_v17  ;;  %vm536_vm8 = vweird.f32 %v529_v17 }
 0x201   :  { %v600_v18 = vpop.eup %599 }
 0x202   :  { %v531_v19 = vmul.f32 %v600_v18, %v529_v17  ;;  %vm537_vm7 = vweird.f32 %v600_v18 }
 0x203   :  { %vm538_vm9 = vmor %vm536_vm8, %vm537_vm7 }
 0x204   :  { %v532_v6 = vmul.f32 %v600_v18, %v531_v19 }
 0x206   :  { %v533_v20 = vmul.f32 0.5, %v532_v6 }
 0x208   :  { %v534_v7 = vsub.f32 1.5, %v533_v20 }
 0x20a   :  { %v535_v21 = vmul.f32 %v600_v18, %v534_v7 }
 0x20c   :  { %v539_v23 = vsel %vm538_vm9, %v600_v18, %v535_v21 }
 0x20d   :  { %v547_v24 = vmul.f32 %v539_v23, %v489_v44  ;;  %v548_v27 = vmul.f32 %v539_v23, %v504_v14  ;;  %v540_v29 = vmul.f32 %v539_v23, %v911_v22  ;;  %v541_v32 = vmul.f32 %v539_v23, %v909_v30 }
 0x20e   :  { %v542_v33 = vmul.f32 %v539_v23, %v913_v25  ;;  %v543_v34 = vmul.f32 %v539_v23, %v917_v36  ;;  %v544_v35 = vmul.f32 %v539_v23, %v480_v31  ;;  %v545_v28 = vmul.f32 %v539_v23, %v483_v55 }
 0x20f   :  { %v556_v37 = vsub.f32 %v547_v24, %v548_v27  ;;  %v549_v38 = vsub.f32 %v540_v29, %v548_v27  ;;  %v550_v39 = vsub.f32 %v541_v32, %v548_v27  ;;  %v546_v52 = vmul.f32 %v539_v23, %v486_v41 }
 0x210   :  { %v551_v53 = vsub.f32 %v542_v33, %v548_v27  ;;  %v552_v26 = vsub.f32 %v543_v34, %v548_v27  ;;  %v553_v54 = vsub.f32 %v544_v35, %v548_v27  ;;  %v554_v56 = vsub.f32 %v545_v28, %v548_v27 }
 0x211   :  { %564 = vst [vmem:[#allocation10 + $0x38] sm:$0xff] %v556_v37  ;;  %v555_v30 = vsub.f32 %v546_v52, %v548_v27 }
 0x212   :  { %557 = vst [vmem:[#allocation10] sm:$0xff] %v549_v38 }
 0x213   :  { %558 = vst [vmem:[#allocation10 + $0x8] sm:$0xff] %v550_v39 }
 0x214   :  { %559 = vst [vmem:[#allocation10 + $0x10] sm:$0xff] %v551_v53 }
 0x215   :  { %560 = vst [vmem:[#allocation10 + $0x18] sm:$0xff] %v552_v26 }
 0x216   :  { %561 = vst [vmem:[#allocation10 + $0x20] sm:$0xff] %v553_v54 }
 0x217   :  { %562 = vst [vmem:[#allocation10 + $0x28] sm:$0xff] %v554_v56 }
 0x218   :  { %563 = vst [vmem:[#allocation10 + $0x30] sm:$0xff] %v555_v30 }
 0x219   :  { %577 = dma.vmem_to_hbm [thread:$0]  %s570_s15, 1024, %s572_s18, [#allocation4], %s733_s30, %s733_s30, %s734_s6  }
 0x21a   :  { %727 = dma.done.wait [#allocation4], 1024  }
 0x21b   :  { %728 = vsyncadd [#allocation4], 4294966272 }
 0x21c   :  { %582 = vsyncpa [#allocation3], 1 }
 0x21d   :  { %583 = vsyncpa [#allocation6], 1 }
 0x21e   :  { %584 = vsyncpa [#allocation9], 1 }
 0x21f   :  { %585 = vsyncpa [#allocation4], 1 }

</bundles_post_ra>
